<compile_context>
chip_gen: v5e
topology: v5e:2x2
jax: 0.10.0
libtpu: 0.0.40
codegen_flags: <defaults>
</compile_context>

<pallas_src>
import functools

import jax
import jax.numpy as jnp
from jax import lax
from jax.experimental import pallas as pl
from jax.experimental.pallas import tpu as pltpu


def _round_up(n: int, m: int) -> int:
    return ((n + m - 1) // m) * m


def _linear_kernel(x_ref, w_ref, b_ref, o_ref):
    """One batch tile of y = x @ w^T + b   (out_features == 1).

    x_ref : (TM, F)    VMEM  -- streamed input tile (multi-buffered by Pallas)
    w_ref : (1, F)     VMEM  -- resident weight row (PyTorch layout (out=1, in))
    b_ref : (1,)       SMEM  -- scalar bias
    o_ref : (1, 1, TM) VMEM  -- lane-dense output slab for this tile
    """
    # (1, F) . (TM, F)^T -> (1, TM): lane-major result, f32 accumulation.
    # precision=DEFAULT keeps this a single MXU pass (one push of the x tile).
    acc = jnp.einsum(
        "of,mf->om",
        w_ref[...],
        x_ref[...],
        preferred_element_type=jnp.float32,
        precision=lax.Precision.DEFAULT,
    )
    acc = acc + b_ref[0]
    # One wide (1, TM) store: batch sits on the lane axis -> dense writeback.
    o_ref[0] = acc.astype(o_ref.dtype)


def _x_block_spec(tm: int, F: int, num_tiles: int) -> pl.BlockSpec:
    """x stream spec; triple-buffer when there are enough tiles to benefit."""
    if num_tiles > 2:
        try:
            return pl.BlockSpec(
                (tm, F), lambda i: (i, 0), pipeline_mode=pl.Buffered(3)
            )
        except TypeError:  # older BlockSpec without pipeline_mode
            pass
    return pl.BlockSpec((tm, F), lambda i: (i, 0))


@functools.partial(jax.jit, static_argnames=("window_len", "block_rows"))
def model_forward(x, weight, bias, *, window_len, block_rows=16384):
    """Equivalent of Model.forward: x @ weight.T + bias, out_features == 1."""
    B, F = x.shape
    assert F == window_len * 15, "x.shape[1] must equal window_len * 15"

    w = weight.reshape(1, F)   # nn.Linear weight is already (out=1, in=F)
    b = bias.reshape(1)

    # --- choose the batch tile ------------------------------------------------
    # Keep the user-supplied cap legal: a multiple of 128 -> (8,128)-aligned
    # blocks and lane-dense output slabs.
    block_rows = max(128, _round_up(int(block_rows), 128))

    if B <= 256:
        # Too small to benefit from splitting; one full-extent tile is always
        # a legal block shape regardless of divisibility.
        tm = B
    else:
        # At least two tiles so the "parallel" grid axis can be sharded across
        # both v7x TensorCores, each a multiple of 128 rows.
        tm = min(block_rows, _round_up(pl.cdiv(B, 2), 128))
    num_tiles = pl.cdiv(B, tm)

    # Prefer an even tile count (balanced 2-TensorCore split on v7x).
    if num_tiles > 1 and num_tiles % 2 == 1:
        tm_even = _round_up(pl.cdiv(B, num_tiles + 1), 128)
        if pl.cdiv(B, tm_even) % 2 == 0:
            tm = tm_even
            num_tiles = pl.cdiv(B, tm)

    # --- scoped-VMEM budget (explicit so large tiles also fit v5e's 16 MiB
    #     default; capped below v7x's 64 MiB physical VMEM) --------------------
    itemsize = x.dtype.itemsize
    lane_f = _round_up(F, 128)
    n_xbufs = 3 if num_tiles > 2 else 2
    x_bytes = n_xbufs * _round_up(tm, 8) * lane_f * itemsize
    out_bytes = 2 * 8 * _round_up(tm, 128) * itemsize
    vmem_limit_bytes = int(
        min(max(x_bytes + out_bytes + (4 << 20), 16 << 20), 56 << 20)
    )

    out = pl.pallas_call(
        _linear_kernel,
        out_shape=jax.ShapeDtypeStruct((num_tiles, 1, tm), x.dtype),
        grid=(num_tiles,),
        in_specs=[
            _x_block_spec(tm, F, num_tiles),                       # stream x
            pl.BlockSpec((1, F), lambda i: (0, 0)),                # resident weight
            pl.BlockSpec(memory_space=pltpu.MemorySpace.SMEM),     # scalar bias
        ],
        out_specs=pl.BlockSpec((1, 1, tm), lambda i: (i, 0, 0)),
        compiler_params=pltpu.CompilerParams(
            # Independent batch tiles -> shard across TensorCores (v7x megacore).
            dimension_semantics=("parallel",),
            vmem_limit_bytes=vmem_limit_bytes,
        ),
        cost_estimate=pl.CostEstimate(
            flops=2 * B * F,
            transcendentals=0,
            bytes_accessed=itemsize * (B * F + F) + 4 * (B + 1),
        ),
    )(x, w, b)

    # (num_tiles, 1, tm) lane-dense slabs -> (B, 1).  Rows >= B from a partial
    # last tile were computed from undefined padded data and are sliced away.
    return out.reshape(num_tiles * tm)[:B].reshape(B, 1)


if __name__ == "__main__":
    window_len = 8
    F = window_len * 15           # 120
    B = 4

    key = jax.random.PRNGKey(0)
    kx, kw, kb, kx2, kx3 = jax.random.split(key, 5)

    # PyTorch-style uniform(-1/sqrt(F), 1/sqrt(F)) init, snapped to a coarse
    # grid so every value is exactly representable in bf16: the checks below
    # are then insensitive to the MXU's default (bf16-pass) f32 matmul mode.
    bound = 1.0 / (F ** 0.5)
    weight = jnp.round(
        jax.random.uniform(kw, (1, F), jnp.float32, -bound, bound) * 64.0) / 64.0
    bias = jnp.round(
        jax.random.uniform(kb, (1,), jnp.float32, -bound, bound) * 64.0) / 64.0
    x = jnp.round(jax.random.normal(kx, (B, F), jnp.float32) * 4.0) / 4.0

    # 1) tiny batch: single full-extent tile.
    out = model_forward(x, weight, bias, window_len=window_len)
    out = jax.block_until_ready(out)
    ref = x @ weight.T + bias
    assert out.shape == (B, 1)
    assert jnp.allclose(out, ref, atol=1e-5, rtol=1e-5)

    # 2) tiled / pipelined path: multiple grid steps + partial last batch tile.
    B2 = 300
    x2 = jnp.round(jax.random.normal(kx2, (B2, F), jnp.float32) * 4.0) / 4.0
    out2 = jax.block_until_ready(
        model_forward(x2, weight, bias, window_len=window_len, block_rows=128))
    ref2 = x2 @ weight.T + bias
    assert out2.shape == (B2, 1)
    assert jnp.allclose(out2, ref2, atol=1e-5, rtol=1e-5)

    # 3) default block_rows with B > 256: exercises the >=2-tile megacore split
    #    (tm rounded to 128) and a partial last tile.
    B3 = 520
    x3 = jnp.round(jax.random.normal(kx3, (B3, F), jnp.float32) * 4.0) / 4.0
    out3 = jax.block_until_ready(
        model_forward(x3, weight, bias, window_len=window_len))
    ref3 = x3 @ weight.T + bias
    assert out3.shape == (B3, 1)
    assert jnp.allclose(out3, ref3, atol=1e-5, rtol=1e-5)

    print("KERNEL_OK")
</pallas_src>

<mosaic_0001>
module attributes {stable_mosaic.version = 11 : i64} {
  func.func @_linear_kernel(%arg0: i32, %arg1: memref<4x120xf32, #tpu.memory_space<vmem>>, %arg2: memref<1x120xf32, #tpu.memory_space<vmem>>, %arg3: memref<1xf32, #tpu.memory_space<smem>>, %arg4: memref<1x1x4xf32, #tpu.memory_space<vmem>>) attributes {dimension_semantics = [#tpu.dimension_semantics<parallel>], iteration_bounds = array<i64: 1>, scalar_prefetch = 0 : i64, scratch_operands = 0 : i64, tpu.core_type = #tpu.core_type<tc>, window_params = [{transform_indices = @transform_0, window_bounds = array<i64: 4, 120>}, {pipeline_mode = #tpu.pipeline_mode<synchronous>, transform_indices = @transform_1, window_bounds = array<i64: 1, 120>}, {transform_indices = @transform_2, window_bounds = array<i64: 1>}, {transform_indices = @transform_3, window_bounds = array<i64: 1, 1, 4>}]} {
    %c0 = arith.constant 0 : index
    %c0_0 = arith.constant 0 : index
    %0 = vector.load %arg2[%c0, %c0_0] : memref<1x120xf32, #tpu.memory_space<vmem>>, vector<1x120xf32>
    %c0_1 = arith.constant 0 : index
    %c0_2 = arith.constant 0 : index
    %1 = vector.load %arg1[%c0_1, %c0_2] : memref<4x120xf32, #tpu.memory_space<vmem>>, vector<4x120xf32>
    "tpu.trace_start"() <{level = 10 : i32, message = "of,mf->om"}> : () -> ()
    %cst = arith.constant dense<0.000000e+00> : vector<1x4xf32>
    %2 = tpu.matmul %0, %1, %cst {dimension_numbers = #tpu.dot_dimension_numbers<[1], [1], [0], [0], [0, 0, 1, 0], [], []>} : vector<1x120xf32>, vector<4x120xf32>, vector<1x4xf32> -> vector<1x4xf32>
    "tpu.trace_stop"() : () -> ()
    %c0_3 = arith.constant 0 : index
    %3 = memref.load %arg3[%c0_3] : memref<1xf32, #tpu.memory_space<smem>>
    %4 = vector.broadcast %3 : f32 to vector<1x4xf32>
    %5 = arith.addf %2, %4 : vector<1x4xf32>
    %c0_4 = arith.constant 0 : index
    %c0_5 = arith.constant 0 : index
    %c0_6 = arith.constant 0 : index
    %6 = vector.load %arg4[%c0_4, %c0_5, %c0_6] : memref<1x1x4xf32, #tpu.memory_space<vmem>>, vector<1x1x4xf32>
    %7 = vector.shape_cast %6 : vector<1x1x4xf32> to vector<1x4xf32>
    %8 = vector.shape_cast %5 : vector<1x4xf32> to vector<1x1x4xf32>
    tpu.vector_store %arg4[%c0_4, %c0_5, %c0_6], %8 {strides = array<i32>} : memref<1x1x4xf32, #tpu.memory_space<vmem>>, vector<1x1x4xf32>,
    return
  }
  func.func @transform_0(%arg0: i32) -> (i32, i32) {
    %c0_i32 = arith.constant 0 : i32
    %c0_i32_0 = arith.constant 0 : i32
    return %arg0, %c0_i32 : i32, i32
  }
  func.func @transform_1(%arg0: i32) -> (i32, i32) {
    %c0_i32 = arith.constant 0 : i32
    %c0_i32_0 = arith.constant 0 : i32
    %c0_i32_1 = arith.constant 0 : i32
    return %c0_i32, %c0_i32_0 : i32, i32
  }
  func.func @transform_2(%arg0: i32) -> i32 {
    %c0_i32 = arith.constant 0 : i32
    %c0_i32_0 = arith.constant 0 : i32
    return %c0_i32 : i32
  }
  func.func @transform_3(%arg0: i32) -> (i32, i32, i32) {
    %c0_i32 = arith.constant 0 : i32
    %c0_i32_0 = arith.constant 0 : i32
    %c0_i32_1 = arith.constant 0 : i32
    return %arg0, %c0_i32, %c0_i32_0 : i32, i32, i32
  }
}

</mosaic_0001>

<bundles_post_ra>
// kernel: model_forward.1
= control target key start
LH: loop header
LB: loop body
LE: loop exit
PB: predicated region body
PF: predicated region fallthrough
CT: control target
= control target key end

     0   :  { %9 = vsyncpa [#allocation4], 0  ;;  %s170_s0 = inlined_call_operand.hbm [shape: f32[4,120], index: 0, kind: input, shape index: {}]   ;;  %s171_s1 = inlined_call_operand.vmem [shape: f32[1,120], index: 1, kind: input, shape index: {}]   ;;  %s172_s2 = inlined_call_operand.<no memory space> [shape: f32[1], index: 2, kind: input, shape index: {}]   ;;  %s173_s3 = inlined_call_operand.hbm [shape: f32[1,1,4], index: 3, kind: output, shape index: {}]  }
   0x1   :  { %10 = vsyncpa [#allocation5], 0  ;;  %s16_s14 = sshll.u32 %s170_s0, 4  ;;  %s136_s15 = smov [#allocation3]   ;;  %s17_s14 = int_to_ptr.hbm [resolvable:$true] %s16_s14 }
   0x2   :  { %s18_s16 = sshll.u32 %s136_s15, 4  ;;  %s19_s16 = int_to_ptr.vmem [resolvable:$true] %s18_s16 }
   0x3   :  { %21 = dma.hbm_to_vmem [thread:$0]  %s17_s14, 64, %s19_s16, [#allocation4]  }
   0x4   :  { %132 = dma.done.wait [#allocation4], 64  }
   0x5   :  { %133 = vsyncadd [#allocation4], 4294967232  ;;  %vm34_vm0 = vcmask 982016   ;;  %v31_v0 = vld [vmem:[#allocation3] sm:$0xf]  ;;  %v33_v2 = vstv %s172_s2  ;;  %s137_s0 = smov [#allocation6]  }
   0x6   :  { %80 = vmatpush.xpose.msk.msra.mxu0 %vm34_vm0, %v31_v0  ;;  %v30_v1 = vld [vmem:[%s171_s1] sm:$0x1]  ;;  %s68_s21 = sshll.u32 %s137_s0, 4  ;;  %s70_s24 = sshll.u32 %s173_s3, 4  ;;  %vm61_vm1 = vcmask 24576   ;;  %s69_s21 = int_to_ptr.vmem [resolvable:$true] %s68_s21  ;;  %s71_s24 = int_to_ptr.hbm [resolvable:$true] %s70_s24 }
   0x9   :  { %81 = vmatmul.msk.f32.vlgmr.msra.gmra.mxu0 %vm34_vm0, %v30_v1 }
  0x86   :  { %v58_v3 = vpop.f32.mrf.mxu0 }
  0x87   :  { %v59_v4 = vadd.f32 %v58_v3, %v33_v2 }
  0x89   :  { %62 = vst.msk [vmem:[#allocation6] sm:$0x1] %vm61_vm1, %v59_v4 }
  0x8a   :  { %73 = dma.vmem_to_hbm [thread:$0]  %s69_s21, 16, %s71_s24, [#allocation5]  }
  0x8b   :  { %134 = dma.done.wait [#allocation5], 16  }
  0x8c   :  { %135 = vsyncadd [#allocation5], 4294967280 }
  0x8d   :  { %78 = vsyncpa [#allocation4], 1 }
  0x8e   :  { %79 = vsyncpa [#allocation5], 1 }

</bundles_post_ra>
